<compile_context>
chip_gen: v7x
topology: tpu7x:2x2x1
jax: 0.10.0
libtpu: 0.0.40
codegen_flags: <defaults>
</compile_context>

<pallas_src>
import functools

import numpy as np

import jax
import jax.numpy as jnp
from jax import lax
from jax.experimental import pallas as pl
from jax.experimental.pallas import tpu as pltpu

BN_EPS = 1e-5
K = 9            # conv kernel size
STRIDE = 2
PAD = 4
NTAP = 5         # ceil(K / STRIDE): shifted row-groups used by the transpose conv
SHIFT0 = PAD // STRIDE   # = 2
LANES = 128      # TPU vreg lane width

# packed parameter-slab row indices
ROW_B_ENC, ROW_GAMMA, ROW_BETA, ROW_B_MU, ROW_B_LV = 0, 1, 2, 3, 4
ROW_DEC_BIAS = 8          # rows [8 : 8+R) hold the per-row decoder bias table


def _vae_kernel(xcol_ref, wenc_ref, wml_ref, weo_ref, sshift_ref, pslab_ref,
                eps_ref, mulv_ref, dec_ref, *, batch, lo, latent):
    f32 = jnp.float32
    rows = batch * lo
    pv = pslab_ref[...]                                     # [8+R, 128] packed params (f32)

    # ---- encoder Conv1d(k=9, s=2, p=4) == one im2col matmul (128-lane padded) ----
    enc = jnp.dot(xcol_ref[...], wenc_ref[...].astype(f32),
                  preferred_element_type=f32) + pv[ROW_B_ENC:ROW_B_ENC + 1, :]

    # ---- BatchNorm1d, training-mode biased batch stats, two-pass variance ----
    mean = jnp.mean(enc, axis=0, keepdims=True)
    cent = enc - mean
    var = jnp.mean(cent * cent, axis=0, keepdims=True)
    bn = (cent * lax.rsqrt(var + BN_EPS) * pv[ROW_GAMMA:ROW_GAMMA + 1, :]
          + pv[ROW_BETA:ROW_BETA + 1, :])

    # ---- fc_mu | fc_logvar fused into a single 256-wide matmul ----
    b_ml = jnp.concatenate(
        [pv[ROW_B_MU:ROW_B_MU + 1, :], pv[ROW_B_LV:ROW_B_LV + 1, :]], axis=-1)
    ml = jnp.dot(bn, wml_ref[...].astype(f32), preferred_element_type=f32) + b_ml
    mulv_ref[...] = ml                                      # lane-dense [R, 2*latent]
    mu = ml[:, :latent]
    logvar = ml[:, latent:]

    # ---- reparameterize: z = mu + eps * exp(0.5*logvar)  (f32, EUP exp) ----
    z = mu + eps_ref[...] * jnp.exp(0.5 * logvar)

    # ---- decoder: latent_to_decoder folded into ConvTranspose1d(k=9,s=2,p=4,op=1) ----
    # zcol[:, j*latent:(j+1)*latent] = S_j @ z, where S_j is a constant 0/1
    # shift + same-batch mask matrix (MXU does the row shift + edge masking:
    # no relayouts, no masked selects).  One fused matmul then produces the
    # even|odd interleaved output channels; lanes >= 2*C_in stay exactly zero.
    s_all = sshift_ref[...]                                 # [NTAP*R, R]
    pieces = [
        jnp.dot(s_all[j * rows:(j + 1) * rows, :], z, preferred_element_type=f32)
        for j in range(NTAP)
    ]
    zcol = jnp.concatenate(pieces, axis=-1)                 # [R, NTAP*latent]
    dec = jnp.dot(zcol, weo_ref[...].astype(f32), preferred_element_type=f32)
    # edge-aware bias table (b_tc + per-valid-tap b_dec contribution), added once
    dec_ref[...] = dec + pv[ROW_DEC_BIAS:ROW_DEC_BIAS + rows, :]


def init_params(key, input_dim, latent_dim):
    ks = jax.random.split(key, 12)

    def nrm(k, shape, scale):
        return jax.random.normal(k, shape, jnp.float32) * scale

    p = {}
    # shapes follow torch conventions exactly
    p['w_enc'] = nrm(ks[0], (latent_dim, input_dim, K), (input_dim * K) ** -0.5)
    p['b_enc'] = nrm(ks[1], (latent_dim,), 0.1)
    p['gamma'] = 1.0 + nrm(ks[2], (latent_dim,), 0.1)
    p['beta'] = nrm(ks[3], (latent_dim,), 0.1)
    p['w_mu'] = nrm(ks[4], (latent_dim, latent_dim), latent_dim ** -0.5)
    p['b_mu'] = nrm(ks[5], (latent_dim,), 0.1)
    p['w_lv'] = nrm(ks[6], (latent_dim, latent_dim), latent_dim ** -0.5)
    p['b_lv'] = nrm(ks[7], (latent_dim,), 0.1)
    p['w_dec'] = nrm(ks[8], (latent_dim, latent_dim), latent_dim ** -0.5)
    p['b_dec'] = nrm(ks[9], (latent_dim,), 0.1)
    p['w_tc'] = nrm(ks[10], (latent_dim, input_dim, K), (latent_dim * K) ** -0.5)
    p['b_tc'] = nrm(ks[11], (input_dim,), 0.1)
    return p


def quantize_weights(p):
    """bf16 round-trip the weight matrices (per perf review: weights are stored /
    DMA'd in bf16; biases / BN affine stay f32)."""
    q = dict(p)
    for k in ('w_enc', 'w_mu', 'w_lv', 'w_dec', 'w_tc'):
        q[k] = p[k].astype(jnp.bfloat16).astype(jnp.float32)
    return q


def _build_constants(params, B, C_in, L):
    """Trace-time construction of all kernel operands (layout plumbing, not compute)."""
    hp = lax.Precision.HIGHEST
    latent = params['w_enc'].shape[0]
    assert latent == LANES, "demo kernel assumes latent_dim == 128 (one lane group)"
    Lo = L // STRIDE
    R = B * Lo
    KC = K * C_in
    assert KC <= LANES and 2 * C_in <= LANES

    # encoder im2col weight [K*C_in, latent], zero-padded to 128 contraction lanes, bf16
    w_enc_mat = jnp.transpose(params['w_enc'], (2, 1, 0)).reshape(KC, latent)
    w_enc_mat = jnp.pad(w_enc_mat, ((0, LANES - KC), (0, 0))).astype(jnp.bfloat16)

    # fused mu|logvar weight [latent, 2*latent], bf16
    w_ml = jnp.concatenate([params['w_mu'].T, params['w_lv'].T], axis=1).astype(jnp.bfloat16)

    # fused decoder weight: latent_to_decoder folded into the transpose-conv taps.
    # block j rows: [ w_dec.T @ w_tc[:,:,2j] | w_dec.T @ w_tc[:,:,2j+1] | 0-pad ]
    wdT = params['w_dec'].T                                 # [latent(in), latent(ci)]
    w_tc = params['w_tc']                                   # [latent(ci), C_in(co), K]
    blocks = []
    for j in range(NTAP):
        f_even = jnp.matmul(wdT, w_tc[:, :, 2 * j], precision=hp)
        if 2 * j + 1 < K:
            f_odd = jnp.matmul(wdT, w_tc[:, :, 2 * j + 1], precision=hp)
        else:
            f_odd = jnp.zeros_like(f_even)
        blocks.append(jnp.concatenate([f_even, f_odd], axis=1))     # [latent, 2*C_in]
    w_eo = jnp.concatenate(blocks, axis=0)                          # [NTAP*latent, 2*C_in]
    w_eo = jnp.pad(w_eo, ((0, 0), (0, LANES - 2 * C_in))).astype(jnp.bfloat16)

    # constant shift + same-batch mask matrices S_j, stacked: [NTAP*R, R]
    # S_j[b*Lo+m, b*Lo+q] = 1 iff q = m + 2 - j lies inside [0, Lo)
    s = np.zeros((NTAP * R, R), np.float32)
    for j in range(NTAP):
        for b in range(B):
            for m in range(Lo):
                q = m + SHIFT0 - j
                if 0 <= q < Lo:
                    s[j * R + b * Lo + m, b * Lo + q] = 1.0
    s_shift = jnp.asarray(s)

    # edge-aware decoder bias table: b_tc + sum over *valid* taps of b_dec @ w_tc[:,:,k]
    bvec = jnp.einsum('i,iok->ok', params['b_dec'], w_tc, precision=hp)   # [C_in, K]
    m_even = np.zeros((Lo, K), np.float32)
    m_odd = np.zeros((Lo, K), np.float32)
    for m in range(Lo):
        for j in range(NTAP):
            q = m + SHIFT0 - j
            if 0 <= q < Lo:
                m_even[m, 2 * j] = 1.0
                if 2 * j + 1 < K:
                    m_odd[m, 2 * j + 1] = 1.0
    dbe = jnp.matmul(jnp.asarray(m_even), bvec.T, precision=hp) + params['b_tc'][None, :]
    dbo = jnp.matmul(jnp.asarray(m_odd), bvec.T, precision=hp) + params['b_tc'][None, :]
    dec_bias = jnp.concatenate([dbe, dbo], axis=1)                  # [Lo, 2*C_in]
    dec_bias = jnp.pad(dec_bias, ((0, 0), (0, LANES - 2 * C_in)))
    dec_bias = jnp.tile(dec_bias, (B, 1))                           # [R, 128]

    # packed 1-row parameter slab: one input instead of six
    pslab = jnp.zeros((ROW_DEC_BIAS + R, LANES), jnp.float32)
    pslab = pslab.at[ROW_B_ENC, :latent].set(params['b_enc'])
    pslab = pslab.at[ROW_GAMMA, :latent].set(params['gamma'])
    pslab = pslab.at[ROW_BETA, :latent].set(params['beta'])
    pslab = pslab.at[ROW_B_MU, :latent].set(params['b_mu'])
    pslab = pslab.at[ROW_B_LV, :latent].set(params['b_lv'])
    pslab = pslab.at[ROW_DEC_BIAS:, :].set(dec_bias)

    return w_enc_mat, w_ml, w_eo, s_shift, pslab


@jax.jit
def vae_forward_pallas(x, params, eps):
    B, C_in, L = x.shape
    latent = params['w_enc'].shape[0]
    Lo = L // STRIDE
    R = B * Lo
    KC = K * C_in

    w_enc_mat, w_ml, w_eo, s_shift, pslab = _build_constants(params, B, C_in, L)

    # glue: im2col for the strided conv, zero-padded to 128 lanes
    x_pad = jnp.pad(x, ((0, 0), (0, 0), (PAD, PAD)))
    idx = STRIDE * jnp.arange(Lo)[:, None] + jnp.arange(K)[None, :]     # [Lo, K]
    xcol = x_pad[:, :, idx]                                             # [B, C_in, Lo, K]
    xcol = jnp.transpose(xcol, (0, 2, 3, 1)).reshape(R, KC)
    xcol = jnp.pad(xcol, ((0, 0), (0, LANES - KC)))                     # [R, 128]

    eps_flat = eps.reshape(R, latent)

    vmem = pl.BlockSpec(memory_space=pltpu.MemorySpace.VMEM)
    kernel = functools.partial(_vae_kernel, batch=B, lo=Lo, latent=latent)
    mulv, dec = pl.pallas_call(
        kernel,
        out_shape=(
            jax.ShapeDtypeStruct((R, 2 * latent), jnp.float32),  # mu | logvar (lane-dense)
            jax.ShapeDtypeStruct((R, LANES), jnp.float32),       # even|odd decoder slab (lane-dense)
        ),
        in_specs=[vmem] * 7,
        out_specs=(vmem, vmem),
    )(xcol, w_enc_mat, w_ml, w_eo, s_shift, pslab, eps_flat)

    mu = mulv[:, :latent].reshape(B, Lo, latent)
    logvar = mulv[:, latent:].reshape(B, Lo, latent)
    # de-interleave even/odd output positions back to NCL [B, C_in, L]
    rec = dec[:, :2 * C_in].reshape(B, Lo, 2, C_in).reshape(B, L, C_in).transpose(0, 2, 1)
    return rec, mu, logvar


def vae_forward_reference(x, p, eps):
    """Pure-JAX reference mirroring the torch module (training-mode BN), f32 HIGHEST."""
    hp = lax.Precision.HIGHEST
    enc = lax.conv_general_dilated(
        x, p['w_enc'], window_strides=(STRIDE,), padding=[(PAD, PAD)],
        dimension_numbers=('NCH', 'OIH', 'NCH'), precision=hp)
    enc = enc + p['b_enc'][None, :, None]
    mean = jnp.mean(enc, axis=(0, 2), keepdims=True)
    var = jnp.mean((enc - mean) ** 2, axis=(0, 2), keepdims=True)
    bn = (enc - mean) / jnp.sqrt(var + BN_EPS)
    bn = bn * p['gamma'][None, :, None] + p['beta'][None, :, None]
    hb = jnp.transpose(bn, (0, 2, 1))                                   # [B, Lo, latent]
    mu = jnp.einsum('bti,oi->bto', hb, p['w_mu'], precision=hp) + p['b_mu']
    logvar = jnp.einsum('bti,oi->bto', hb, p['w_lv'], precision=hp) + p['b_lv']
    z = mu + eps * jnp.exp(0.5 * logvar)
    h = jnp.einsum('bti,oi->bto', z, p['w_dec'], precision=hp) + p['b_dec']
    hc = jnp.transpose(h, (0, 2, 1))                                    # [B, latent, Lo]
    # ConvTranspose1d == conv with lhs_dilation=stride, flipped kernel,
    # padding (k-1-P, k-1-P+output_padding) = (4, 5)
    rhs = jnp.transpose(p['w_tc'], (1, 0, 2))[:, :, ::-1]               # [C_out, latent, K]
    rec = lax.conv_general_dilated(
        hc, rhs, window_strides=(1,), padding=[(4, 5)], lhs_dilation=(STRIDE,),
        dimension_numbers=('NCH', 'OIH', 'NCH'), precision=hp)
    rec = rec + p['b_tc'][None, :, None]
    return rec, mu, logvar


if __name__ == "__main__":
    B, C_in, L, LATENT = 2, 4, 16, 128
    key = jax.random.PRNGKey(0)
    kx, keps, kp = jax.random.split(key, 3)

    x = jax.random.normal(kx, (B, C_in, L), jnp.float32)
    # torch.randn_like noise, generated outside the kernel for determinism
    eps = jax.random.normal(keps, (B, L // 2, LATENT), jnp.float32)

    # Weights are stored in bf16 on the Pallas path (perf-review item); the same
    # bf16-rounded weights feed the reference so the check isolates kernel
    # numerics from that deliberate storage choice.
    params = quantize_weights(init_params(kp, C_in, LATENT))

    rec, mu, logvar = jax.block_until_ready(vae_forward_pallas(x, params, eps))

    # shape checks mirroring the torch forward
    assert rec.shape == (B, C_in, L)
    assert mu.shape == (B, L // 2, LATENT)
    assert logvar.shape == (B, L // 2, LATENT)

    # Tolerance budget: bf16 rounding of the *fused* decoder weight (the kernel
    # rounds w_dec.T @ w_tc once; the reference applies the two factors as
    # separate f32 ops) plus default-precision MXU passes vs the reference's
    # HIGHEST-precision f32 math.
    rec_r, mu_r, lv_r = vae_forward_reference(x, params, eps)
    for name, got, want in (("rec", rec, rec_r), ("mu", mu, mu_r), ("logvar", logvar, lv_r)):
        err = float(jnp.max(jnp.abs(got - want)))
        assert err < 2e-2, f"{name} mismatch: max abs err {err}"

    print("KERNEL_OK")
</pallas_src>

<mosaic_0001>
module attributes {stable_mosaic.version = 11 : i64} {
  func.func @_vae_kernel(%arg0: memref<16x128xf32, #tpu.memory_space<vmem>>, %arg1: memref<128x128xbf16, #tpu.memory_space<vmem>>, %arg2: memref<128x256xbf16, #tpu.memory_space<vmem>>, %arg3: memref<640x128xbf16, #tpu.memory_space<vmem>>, %arg4: memref<80x16xf32, #tpu.memory_space<vmem>>, %arg5: memref<24x128xf32, #tpu.memory_space<vmem>>, %arg6: memref<16x128xf32, #tpu.memory_space<vmem>>, %arg7: memref<16x256xf32, #tpu.memory_space<vmem>>, %arg8: memref<16x128xf32, #tpu.memory_space<vmem>>) attributes {dimension_semantics = [], scalar_prefetch = 0 : i64, scratch_operands = 0 : i64, tpu.core_type = #tpu.core_type<tc>} {
    %c0 = arith.constant 0 : index
    %c0_0 = arith.constant 0 : index
    %0 = vector.load %arg5[%c0, %c0_0] : memref<24x128xf32, #tpu.memory_space<vmem>>, vector<24x128xf32>
    %c0_1 = arith.constant 0 : index
    %c0_2 = arith.constant 0 : index
    %1 = vector.load %arg0[%c0_1, %c0_2] : memref<16x128xf32, #tpu.memory_space<vmem>>, vector<16x128xf32>
    %c0_3 = arith.constant 0 : index
    %c0_4 = arith.constant 0 : index
    %2 = vector.load %arg1[%c0_3, %c0_4] : memref<128x128xbf16, #tpu.memory_space<vmem>>, vector<128x128xbf16>
    %3 = arith.extf %2 : vector<128x128xbf16> to vector<128x128xf32>
    %cst = arith.constant dense<0.000000e+00> : vector<16x128xf32>
    %4 = tpu.matmul %1, %3, %cst {dimension_numbers = #tpu.dot_dimension_numbers<[1], [0], [0], [1], [0, 0, 1, 1], [], []>} : vector<16x128xf32>, vector<128x128xf32>, vector<16x128xf32> -> vector<16x128xf32>
    %5 = vector.extract_strided_slice %0 {offsets = [0, 0], sizes = [1, 128], strides = [1, 1]} : vector<24x128xf32> to vector<1x128xf32>
    %6 = vector.broadcast %5 : vector<1x128xf32> to vector<16x128xf32>
    %7 = arith.addf %4, %6 : vector<16x128xf32>
    %cst_5 = arith.constant dense<0.000000e+00> : vector<128xf32>
    %8 = vector.multi_reduction <add>, %7, %cst_5 [0] : vector<16x128xf32> to vector<128xf32>
    %9 = vector.shape_cast %8 : vector<128xf32> to vector<1x128xf32>
    %cst_6 = arith.constant 1.600000e+01 : f32
    %10 = vector.broadcast %cst_6 : f32 to vector<1x128xf32>
    %11 = arith.divf %9, %10 : vector<1x128xf32>
    %12 = vector.broadcast %11 : vector<1x128xf32> to vector<16x128xf32>
    %13 = arith.subf %7, %12 : vector<16x128xf32>
    %14 = arith.mulf %13, %13 : vector<16x128xf32>
    %cst_7 = arith.constant dense<0.000000e+00> : vector<128xf32>
    %15 = vector.multi_reduction <add>, %14, %cst_7 [0] : vector<16x128xf32> to vector<128xf32>
    %16 = vector.shape_cast %15 : vector<128xf32> to vector<1x128xf32>
    %cst_8 = arith.constant 1.600000e+01 : f32
    %17 = vector.broadcast %cst_8 : f32 to vector<1x128xf32>
    %18 = arith.divf %16, %17 : vector<1x128xf32>
    %cst_9 = arith.constant 9.99999974E-6 : f32
    %19 = vector.broadcast %cst_9 : f32 to vector<1x128xf32>
    %20 = arith.addf %18, %19 : vector<1x128xf32>
    %21 = math.rsqrt %20 : vector<1x128xf32>
    %22 = vector.broadcast %21 : vector<1x128xf32> to vector<16x128xf32>
    %23 = arith.mulf %13, %22 : vector<16x128xf32>
    %24 = vector.extract_strided_slice %0 {offsets = [1, 0], sizes = [1, 128], strides = [1, 1]} : vector<24x128xf32> to vector<1x128xf32>
    %25 = vector.broadcast %24 : vector<1x128xf32> to vector<16x128xf32>
    %26 = arith.mulf %23, %25 : vector<16x128xf32>
    %27 = vector.extract_strided_slice %0 {offsets = [2, 0], sizes = [1, 128], strides = [1, 1]} : vector<24x128xf32> to vector<1x128xf32>
    %28 = vector.broadcast %27 : vector<1x128xf32> to vector<16x128xf32>
    %29 = arith.addf %26, %28 : vector<16x128xf32>
    %30 = vector.extract_strided_slice %0 {offsets = [3, 0], sizes = [1, 128], strides = [1, 1]} : vector<24x128xf32> to vector<1x128xf32>
    %31 = vector.extract_strided_slice %0 {offsets = [4, 0], sizes = [1, 128], strides = [1, 1]} : vector<24x128xf32> to vector<1x128xf32>
    %32 = tpu.concatenate %30, %31 in 1 : vector<1x128xf32>, vector<1x128xf32> -> vector<1x256xf32>
    %c0_10 = arith.constant 0 : index
    %c0_11 = arith.constant 0 : index
    %33 = vector.load %arg2[%c0_10, %c0_11] : memref<128x256xbf16, #tpu.memory_space<vmem>>, vector<128x256xbf16>
    %34 = arith.extf %33 : vector<128x256xbf16> to vector<128x256xf32>
    %cst_12 = arith.constant dense<0.000000e+00> : vector<16x256xf32>
    %35 = tpu.matmul %29, %34, %cst_12 {dimension_numbers = #tpu.dot_dimension_numbers<[1], [0], [0], [1], [0, 0, 1, 1], [], []>} : vector<16x128xf32>, vector<128x256xf32>, vector<16x256xf32> -> vector<16x256xf32>
    %36 = vector.broadcast %32 : vector<1x256xf32> to vector<16x256xf32>
    %37 = arith.addf %35, %36 : vector<16x256xf32>
    %c0_13 = arith.constant 0 : index
    %c0_14 = arith.constant 0 : index
    %38 = vector.load %arg7[%c0_13, %c0_14] : memref<16x256xf32, #tpu.memory_space<vmem>>, vector<16x256xf32>
    tpu.vector_store %arg7[%c0_13, %c0_14], %37 {strides = array<i32>} : memref<16x256xf32, #tpu.memory_space<vmem>>, vector<16x256xf32>,
    %39 = vector.extract_strided_slice %37 {offsets = [0, 0], sizes = [16, 128], strides = [1, 1]} : vector<16x256xf32> to vector<16x128xf32>
    %40 = vector.extract_strided_slice %37 {offsets = [0, 128], sizes = [16, 128], strides = [1, 1]} : vector<16x256xf32> to vector<16x128xf32>
    %c0_15 = arith.constant 0 : index
    %c0_16 = arith.constant 0 : index
    %41 = vector.load %arg6[%c0_15, %c0_16] : memref<16x128xf32, #tpu.memory_space<vmem>>, vector<16x128xf32>
    %cst_17 = arith.constant 5.000000e-01 : f32
    %42 = vector.broadcast %cst_17 : f32 to vector<16x128xf32>
    %43 = arith.mulf %42, %40 : vector<16x128xf32>
    %44 = math.exp %43 : vector<16x128xf32>
    %45 = arith.mulf %41, %44 : vector<16x128xf32>
    %46 = arith.addf %39, %45 : vector<16x128xf32>
    %c0_18 = arith.constant 0 : index
    %c0_19 = arith.constant 0 : index
    %47 = vector.load %arg4[%c0_18, %c0_19] : memref<80x16xf32, #tpu.memory_space<vmem>>, vector<80x16xf32>
    %48 = vector.extract_strided_slice %47 {offsets = [0, 0], sizes = [16, 16], strides = [1, 1]} : vector<80x16xf32> to vector<16x16xf32>
    %cst_20 = arith.constant dense<0.000000e+00> : vector<16x128xf32>
    %49 = tpu.matmul %48, %46, %cst_20 {dimension_numbers = #tpu.dot_dimension_numbers<[1], [0], [0], [1], [0, 0, 1, 1], [], []>} : vector<16x16xf32>, vector<16x128xf32>, vector<16x128xf32> -> vector<16x128xf32>
    %50 = vector.extract_strided_slice %47 {offsets = [16, 0], sizes = [16, 16], strides = [1, 1]} : vector<80x16xf32> to vector<16x16xf32>
    %cst_21 = arith.constant dense<0.000000e+00> : vector<16x128xf32>
    %51 = tpu.matmul %50, %46, %cst_21 {dimension_numbers = #tpu.dot_dimension_numbers<[1], [0], [0], [1], [0, 0, 1, 1], [], []>} : vector<16x16xf32>, vector<16x128xf32>, vector<16x128xf32> -> vector<16x128xf32>
    %52 = vector.extract_strided_slice %47 {offsets = [32, 0], sizes = [16, 16], strides = [1, 1]} : vector<80x16xf32> to vector<16x16xf32>
    %cst_22 = arith.constant dense<0.000000e+00> : vector<16x128xf32>
    %53 = tpu.matmul %52, %46, %cst_22 {dimension_numbers = #tpu.dot_dimension_numbers<[1], [0], [0], [1], [0, 0, 1, 1], [], []>} : vector<16x16xf32>, vector<16x128xf32>, vector<16x128xf32> -> vector<16x128xf32>
    %54 = vector.extract_strided_slice %47 {offsets = [48, 0], sizes = [16, 16], strides = [1, 1]} : vector<80x16xf32> to vector<16x16xf32>
    %cst_23 = arith.constant dense<0.000000e+00> : vector<16x128xf32>
    %55 = tpu.matmul %54, %46, %cst_23 {dimension_numbers = #tpu.dot_dimension_numbers<[1], [0], [0], [1], [0, 0, 1, 1], [], []>} : vector<16x16xf32>, vector<16x128xf32>, vector<16x128xf32> -> vector<16x128xf32>
    %56 = vector.extract_strided_slice %47 {offsets = [64, 0], sizes = [16, 16], strides = [1, 1]} : vector<80x16xf32> to vector<16x16xf32>
    %cst_24 = arith.constant dense<0.000000e+00> : vector<16x128xf32>
    %57 = tpu.matmul %56, %46, %cst_24 {dimension_numbers = #tpu.dot_dimension_numbers<[1], [0], [0], [1], [0, 0, 1, 1], [], []>} : vector<16x16xf32>, vector<16x128xf32>, vector<16x128xf32> -> vector<16x128xf32>
    %58 = tpu.concatenate %49, %51, %53, %55, %57 in 1 : vector<16x128xf32>, vector<16x128xf32>, vector<16x128xf32>, vector<16x128xf32>, vector<16x128xf32> -> vector<16x640xf32>
    %c0_25 = arith.constant 0 : index
    %c0_26 = arith.constant 0 : index
    %59 = vector.load %arg3[%c0_25, %c0_26] : memref<640x128xbf16, #tpu.memory_space<vmem>>, vector<640x128xbf16>
    %60 = arith.extf %59 : vector<640x128xbf16> to vector<640x128xf32>
    %cst_27 = arith.constant dense<0.000000e+00> : vector<16x128xf32>
    %61 = tpu.matmul %58, %60, %cst_27 {dimension_numbers = #tpu.dot_dimension_numbers<[1], [0], [0], [1], [0, 0, 1, 1], [], []>} : vector<16x640xf32>, vector<640x128xf32>, vector<16x128xf32> -> vector<16x128xf32>
    %62 = vector.extract_strided_slice %0 {offsets = [8, 0], sizes = [16, 128], strides = [1, 1]} : vector<24x128xf32> to vector<16x128xf32>
    %63 = arith.addf %61, %62 : vector<16x128xf32>
    %c0_28 = arith.constant 0 : index
    %c0_29 = arith.constant 0 : index
    %64 = vector.load %arg8[%c0_28, %c0_29] : memref<16x128xf32, #tpu.memory_space<vmem>>, vector<16x128xf32>
    tpu.vector_store %arg8[%c0_28, %c0_29], %63 {strides = array<i32>} : memref<16x128xf32, #tpu.memory_space<vmem>>, vector<16x128xf32>,
    return
  }
}

</mosaic_0001>

<bundles_post_ra>
// kernel: vae_forward_pallas.1
= control target key start
LH: loop header
LB: loop body
LE: loop exit
PB: predicated region body
PF: predicated region fallthrough
CT: control target
= control target key end

     0   :  { %v1856_v26 = vmov 0.0   ;;  %v65_v27 = vlaneseq  ;;  %vm343_vm0 = vcmask 130048   ;;  %s2186_s1 = inlined_call_operand.vmem [shape: bf16[128,128], index: 1, kind: input, shape index: {}]   ;;  %s2187_s0 = inlined_call_operand.vmem [shape: f32[16,128], index: 0, kind: input, shape index: {}]   ;;  %s2188_s2 = inlined_call_operand.vmem [shape: bf16[128,256], index: 2, kind: input, shape index: {}]   ;;  %s2189_s5 = inlined_call_operand.vmem [shape: f32[24,128], index: 5, kind: input, shape index: {}]   ;;  %s2190_s4 = inlined_call_operand.vmem [shape: f32[80,16], index: 4, kind: input, shape index: {}]   ;;  %s2191_s3 = inlined_call_operand.vmem [shape: bf16[640,128], index: 3, kind: input, shape index: {}]   ;;  %s2192_s7 = inlined_call_operand.vmem [shape: f32[16,256], index: 7, kind: output, shape index: {0}]   ;;  %s2193_s6 = inlined_call_operand.vmem [shape: f32[16,128], index: 6, kind: input, shape index: {}]   ;;  %s2194_s8 = inlined_call_operand.vmem [shape: f32[16,128], index: 8, kind: output, shape index: {1}]  }
   0x1   :  { %v1155_v0 = vld [vmem:[%s2186_s1] sm:$0xff]   ;;  %v1346_v1 = vld [vmem:[%s2186_s1 + $0x8] sm:$0xff]   ;;  %v1347_v3 = vld [vmem:[%s2186_s1 + $0x10] sm:$0xff]   ;;  %304 = vmatprep.mubr.f32.mxu1 %v1856_v26 }
   0x2   :  { %1630 = vmatprep.subr.bf16.mxu0 %v1155_v0  ;;  %v31_v2 = vld [vmem:[%s2187_s0] sm:$0xff]  ;;  %v1348_v4 = vld [vmem:[%s2186_s1 + $0x18] sm:$0xff]   ;;  %v1350_v6 = vld [vmem:[%s2186_s1 + $0x28] sm:$0xff]   ;;  %v1980_v28 = vshrl.u32 %v65_v27, 7 }
   0x3   :  { %1632 = vmatpush3.bf16.msra.mxu0 %v1155_v0  ;;  %1556 = vmatprep.mubr.f32.mxu0 %v31_v2  ;;  %v1349_v5 = vld [vmem:[%s2186_s1 + $0x20] sm:$0xff]   ;;  %v1351_v7 = vld [vmem:[%s2186_s1 + $0x30] sm:$0xff]   ;;  %v1352_v8 = vld [vmem:[%s2186_s1 + $0x38] sm:$0xff]  }
   0x4   :  { %1634 = vmatprep.subr.bf16.mxu0 %v1346_v1  ;;  %v32_v9 = vld [vmem:[%s2187_s0 + $0x8] sm:$0xff]  ;;  %v1829_v12 = vld [vmem:[%s2188_s2 + $0x14] ss:$8 sps:$4 sm:$0xff]   ;;  %v1831_v13 = vld [vmem:[%s2188_s2 + $0x10] ss:$8 sps:$4 sm:$0xff]   ;;  %v67_v29 = vsub.s32 0, %v1980_v28 }
   0x5   :  { %v1826_v10 = vld [vmem:[%s2188_s2 + $0x4] ss:$8 sps:$4 sm:$0xff]   ;;  %v1828_v11 = vld [vmem:[%s2188_s2] ss:$8 sps:$4 sm:$0xff]   ;;  %v1835_v16 = vld [vmem:[%s2188_s2 + $0x34] ss:$8 sps:$4 sm:$0xff]  }
   0x6   :  { %1662 = vmatprep.subr.bf16.mxu1 %v1826_v10  ;;  %v1832_v14 = vld [vmem:[%s2188_s2 + $0x24] ss:$8 sps:$4 sm:$0xff]   ;;  %v1834_v15 = vld [vmem:[%s2188_s2 + $0x20] ss:$8 sps:$4 sm:$0xff]   ;;  %v1837_v17 = vld [vmem:[%s2188_s2 + $0x30] ss:$8 sps:$4 sm:$0xff]  }
   0x7   :  { %1636 = vmatpush3.bf16.msra.mxu0 %v1346_v1  ;;  %1664 = vmatpush1.bf16.msra.mxu1 %v1828_v11  ;;  %v1838_v18 = vld [vmem:[%s2188_s2 + $0x44] ss:$8 sps:$4 sm:$0xff]   ;;  %v1840_v19 = vld [vmem:[%s2188_s2 + $0x40] ss:$8 sps:$4 sm:$0xff]   ;;  %v1841_v20 = vld [vmem:[%s2188_s2 + $0x54] ss:$8 sps:$4 sm:$0xff]  }
   0x8   :  { %1638 = vmatprep.subr.bf16.mxu0 %v1347_v3  ;;  %1666 = vmatprep.subr.bf16.mxu1 %v1829_v12  ;;  %v1843_v21 = vld [vmem:[%s2188_s2 + $0x50] ss:$8 sps:$4 sm:$0xff]   ;;  %v1844_v22 = vld [vmem:[%s2188_s2 + $0x64] ss:$8 sps:$4 sm:$0xff]   ;;  %v1846_v23 = vld [vmem:[%s2188_s2 + $0x60] ss:$8 sps:$4 sm:$0xff]  }
   0x9   :  { %v1847_v24 = vld [vmem:[%s2188_s2 + $0x74] ss:$8 sps:$4 sm:$0xff]   ;;  %v1849_v25 = vld [vmem:[%s2188_s2 + $0x70] ss:$8 sps:$4 sm:$0xff]   ;;  %v1986_v30 = vld [vmem:[%s2189_s5] sm:$0xff]  ;;  %v171_v57 = vsub.s32 1, %v1980_v28 }
   0xa   :  { %v68_v31 = vrot.slane %v1986_v30, %v67_v29  ;;  %v177_v58 = vsub.s32 2, %v1980_v28  ;;  %v1354_v10 = vld [vmem:[%s2191_s3 + $0x10] sm:$0xff]   ;;  %v1363_v11 = vld [vmem:[%s2191_s3 + $0x58] sm:$0xff]  }
   0xb   :  { %1640 = vmatpush3.bf16.msra.mxu0 %v1347_v3  ;;  %1668 = vmatpush1.bf16.msra.mxu1 %v1831_v13  ;;  %v172_v59 = vrot.slane %v1986_v30, %v171_v57  ;;  %v1355_v12 = vld [vmem:[%s2191_s3 + $0x18] sm:$0xff]   ;;  %v1364_v13 = vld [vmem:[%s2191_s3 + $0x60] sm:$0xff]   ;;  %v1378_v57 = vld [vmem:[%s2191_s3 + $0xd0] sm:$0xff]  }
   0xc   :  { %1642 = vmatprep.subr.bf16.mxu0 %v1348_v4  ;;  %1670 = vmatprep.subr.bf16.mxu1 %v1832_v14  ;;  %v178_v62 = vrot.slane %v1986_v30, %v177_v58  ;;  %v1356_v14 = vld [vmem:[%s2191_s3 + $0x20] sm:$0xff]   ;;  %v1370_v58 = vld [vmem:[%s2191_s3 + $0x90] sm:$0xff]  }
   0xf   :  { %1644 = vmatpush3.bf16.msra.mxu0 %v1348_v4  ;;  %1672 = vmatpush1.bf16.msra.mxu1 %v1834_v15  ;;  %v333_v4 = vld [vmem:[%s2190_s4] sm:$0xff]  ;;  %v1365_v15 = vld [vmem:[%s2191_s3 + $0x68] sm:$0xff]  }
  0x10   :  { %1646 = vmatprep.subr.bf16.mxu0 %v1349_v5  ;;  %1674 = vmatprep.subr.bf16.mxu1 %v1835_v16  ;;  %v1357_v16 = vld [vmem:[%s2191_s3 + $0x28] sm:$0xff]  }
  0x13   :  { %1648 = vmatpush3.bf16.msra.mxu0 %v1349_v5  ;;  %1676 = vmatpush1.bf16.msra.mxu1 %v1837_v17  ;;  %v1360_v5 = vld [vmem:[%s2191_s3 + $0x40] sm:$0xff]   ;;  %v1366_v17 = vld [vmem:[%s2191_s3 + $0x70] sm:$0xff]  }
  0x14   :  { %1650 = vmatprep.subr.bf16.mxu0 %v1350_v6  ;;  %1678 = vmatprep.subr.bf16.mxu1 %v1838_v18  ;;  %v1358_v18 = vld [vmem:[%s2191_s3 + $0x30] sm:$0xff]  }
  0x17   :  { %1652 = vmatpush3.bf16.msra.mxu0 %v1350_v6  ;;  %1680 = vmatpush1.bf16.msra.mxu1 %v1840_v19  ;;  %v1187_v6 = vld [vmem:[%s2191_s3] sm:$0xff]   ;;  %v234_v19 = vsub.s32 3, %v1980_v28 }
  0x18   :  { %1654 = vmatprep.subr.bf16.mxu0 %v1351_v7  ;;  %1682 = vmatprep.subr.bf16.mxu1 %v1841_v20  ;;  %v182_v20 = vrot.slane %v1986_v30, 1 }
  0x1b   :  { %1656 = vmatpush3.bf16.msra.mxu0 %v1351_v7  ;;  %1684 = vmatpush1.bf16.msra.mxu1 %v1843_v21  ;;  %v1361_v7 = vld [vmem:[%s2191_s3 + $0x48] sm:$0xff]   ;;  %v235_v21 = vrot.slane %v1986_v30, %v234_v19 }
  0x1c   :  { %1658 = vmatprep.subr.bf16.mxu0 %v1352_v8  ;;  %1686 = vmatprep.subr.bf16.mxu1 %v1844_v22  ;;  %v239_v22 = vrot.slane %v182_v20, %v234_v19 }
  0x1f   :  { %1660 = vmatpush3.bf16.msra.mxu0 %v1352_v8  ;;  %1688 = vmatpush1.bf16.msra.mxu1 %v1846_v23  ;;  %v1353_v8 = vld [vmem:[%s2191_s3 + $0x8] sm:$0xff]  }
  0x20   :  { %1690 = vmatprep.subr.bf16.mxu1 %v1847_v24  ;;  %1714 = vmatprep.subr.bf16.mxu0 %v1360_v5  ;;  %v1374_v5 = vld [vmem:[%s2191_s3 + $0xb0] sm:$0xff]  }
  0x22   :  { %1557 = vmatmul.mubr.f32.vlgmr.msra.gmra.mrb[0].mxu0 %v32_v9  ;;  %v1362_v9 = vld [vmem:[%s2191_s3 + $0x50] sm:$0xff]  }
  0x23   :  { %1692 = vmatpush1.bf16.msra.mxu1 %v1849_v25  ;;  %1716 = vmatpush3.bf16.msra.mxu0 %v1187_v6  ;;  %v1383_v6 = vld [vmem:[%s2191_s3 + $0xf8] sm:$0xff]  }
  0x24   :  { %1718 = vmatprep.subr.bf16.mxu0 %v1361_v7  ;;  %v1375_v7 = vld [vmem:[%s2191_s3 + $0xb8] sm:$0xff]  }
  0x27   :  { %1720 = vmatpush3.bf16.msra.mxu0 %v1353_v8 }
  0x28   :  { %1722 = vmatprep.subr.bf16.mxu0 %v1362_v9 }
  0x2b   :  { %1724 = vmatpush3.bf16.msra.mxu0 %v1354_v10 }
  0x2c   :  { %1726 = vmatprep.subr.bf16.mxu0 %v1363_v11 }
  0x2f   :  { %1728 = vmatpush3.bf16.msra.mxu0 %v1355_v12  ;;  %v1385_v12 = vld [vmem:[%s2191_s3 + $0x108] sm:$0xff]  }
  0x30   :  { %1730 = vmatprep.subr.bf16.mxu0 %v1364_v13 }
  0x33   :  { %1732 = vmatpush3.bf16.msra.mxu0 %v1356_v14 }
  0x34   :  { %1734 = vmatprep.subr.bf16.mxu0 %v1365_v15  ;;  %v1386_v15 = vld [vmem:[%s2191_s3 + $0x110] sm:$0xff]  }
  0x37   :  { %1736 = vmatpush3.bf16.msra.mxu0 %v1357_v16 }
  0x38   :  { %1738 = vmatprep.subr.bf16.mxu0 %v1366_v17 }
  0x3b   :  { %1740 = vmatpush3.bf16.msra.mxu0 %v1358_v18  ;;  %v1387_v18 = vld [vmem:[%s2191_s3 + $0x118] sm:$0xff]  }
  0xf5   :  { %v1558_v32 = vpop.f32.mrb[0].mxu0 }
  0xf6   :  { %v141_v33 = vadd.f32 %v1558_v32, %v68_v31  ;;  %v135_v34 = vpop.f32.mrb[1].mxu0 }
  0xf7   :  { %v136_v35 = vadd.f32 %v135_v34, %v68_v31 }
  0xf9   :  { %v144_v36 = vadd.f32 %v141_v33, %v136_v35 }
  0xfb   :  { %v145_v37 = vrot.slane %v144_v36, 4 }
  0xfd   :  { %v146_v38 = vadd.f32 %v145_v37, %v144_v36 }
  0xff   :  { %v147_v39 = vrot.slane %v146_v38, 2 }
 0x101   :  { %v148_v40 = vadd.f32 %v147_v39, %v146_v38  ;;  %v322_v38 = vld [vmem:[%s2193_s6 + $0x8] sm:$0xff] }
 0x103   :  { %v149_v41 = vrot.slane %v148_v40, 1 }
 0x105   :  { %v150_v42 = vadd.f32 %v149_v41, %v148_v40 }
 0x107   :  { %v152_v43 = vmul.f32 0.0625, %v150_v42 }
 0x109   :  { %v153_v44 = vsub.f32 %v136_v35, %v152_v43  ;;  %v154_v45 = vsub.f32 %v141_v33, %v152_v43  ;;  %v321_v35 = vld [vmem:[%s2193_s6] sm:$0xff] }
 0x10b   :  { %v155_v46 = vmul.f32 %v153_v44, %v153_v44  ;;  %v156_v47 = vmul.f32 %v154_v45, %v154_v45 }
 0x10d   :  { %v157_v48 = vadd.f32 %v156_v47, %v155_v46  ;;  %v336_v46 = vld [vmem:[%s2190_s4 + $0x18] sm:$0xff]  ;;  %v337_v47 = vld [vmem:[%s2190_s4 + $0x20] sm:$0xff] }
 0x10f   :  { %v158_v49 = vrot.slane %v157_v48, 4 }
 0x111   :  { %v159_v50 = vadd.f32 %v158_v49, %v157_v48  ;;  %v338_v48 = vld [vmem:[%s2190_s4 + $0x28] sm:$0xff]  ;;  %v339_v49 = vld [vmem:[%s2190_s4 + $0x30] sm:$0xff] }
 0x113   :  { %v160_v51 = vrot.slane %v159_v50, 2 }
 0x115   :  { %v161_v52 = vadd.f32 %v160_v51, %v159_v50  ;;  %v340_v50 = vld [vmem:[%s2190_s4 + $0x38] sm:$0xff]  ;;  %v341_v51 = vld [vmem:[%s2190_s4 + $0x40] sm:$0xff] }
 0x117   :  { %v162_v53 = vrot.slane %v161_v52, 1 }
 0x119   :  { %v163_v54 = vadd.f32 %v162_v53, %v161_v52  ;;  %v1376_v52 = vld [vmem:[%s2191_s3 + $0xc0] sm:$0xff]   ;;  %v342_v53 = vld [vmem:[%s2190_s4 + $0x48] sm:$0xff] }
 0x11b   :  { %v164_v55 = vmul.f32 0.0625, %v163_v54  ;;  %v1368_v54 = vld [vmem:[%s2191_s3 + $0x80] sm:$0xff]  }
 0x11d   :  { %v165_v56 = vadd.f32 1e-05, %v164_v55  ;;  %v1377_v55 = vld [vmem:[%s2191_s3 + $0xc8] sm:$0xff]  }
 0x11f   :  { %1850 = vrsqrt.f32 %v165_v56  ;;  %v1369_v56 = vld [vmem:[%s2191_s3 + $0x88] sm:$0xff]  }
 0x129   :  { %v1851_v60 = vpop.eup %1850 }
 0x12a   :  { %v167_v61 = vmul.f32 %v1851_v60, %v153_v44  ;;  %v168_v63 = vmul.f32 %v1851_v60, %v154_v45  ;;  %v334_v44 = vld [vmem:[%s2190_s4 + $0x8] sm:$0xff]  ;;  %v335_v45 = vld [vmem:[%s2190_s4 + $0x10] sm:$0xff]  ;;  %v1371_v60 = vld [vmem:[%s2191_s3 + $0x98] sm:$0xff]  }
 0x12c   :  { %v173_v0 = vmul.f32 %v172_v59, %v167_v61  ;;  %v174_v2 = vmul.f32 %v172_v59, %v168_v63  ;;  %v1379_v59 = vld [vmem:[%s2191_s3 + $0xd8] sm:$0xff]   ;;  %v1380_v61 = vld [vmem:[%s2191_s3 + $0xe0] sm:$0xff]  }
 0x12d   :  { %v1367_v63 = vld [vmem:[%s2191_s3 + $0x78] sm:$0xff]  }
 0x12e   :  { %v179_v1 = vadd.f32 %v178_v62, %v173_v0  ;;  %v180_v3 = vadd.f32 %v178_v62, %v174_v2  ;;  %v1372_v62 = vld [vmem:[%s2191_s3 + $0xa0] sm:$0xff]   ;;  %1742 = vmatprep.subr.bf16.mxu0 %v1367_v63  ;;  %v1359_v0 = vld [vmem:[%s2191_s3 + $0x38] sm:$0xff]   ;;  %v1373_v2 = vld [vmem:[%s2191_s3 + $0xa8] sm:$0xff]  }
 0x12f   :  { %1744 = vmatpush3.bf16.msra.mxu0 %v1359_v0 }
 0x130   :  { %305 = vmatmul.mubr.f32.vlgmr.msra.gmra.mrb[0].mxu1 %v179_v1  ;;  %v1381_v1 = vld [vmem:[%s2191_s3 + $0xe8] sm:$0xff]  }
 0x131   :  { %310 = vmatprep.mubr.f32.mxu1 %v1856_v26 }
 0x134   :  { %311 = vmatmul.mubr.f32.gmra.mrb[2].mxu1 %v180_v3  ;;  %v1384_v3 = vld [vmem:[%s2191_s3 + $0x100] sm:$0xff]  }
 0x135   :  { %1563 = vmatprep.mubr.msk.f32.mxu1 %vm343_vm0, %v333_v4  ;;  %1778 = vmatprep.subr.bf16.mxu0 %v1384_v3  ;;  %v1382_v4 = vld [vmem:[%s2191_s3 + $0xf0] sm:$0xff]  }
 0x203   :  { %v306_v23 = vpop.f32.mrb[0].mxu1 }
 0x204   :  { %v307_v24 = vadd.f32 %v306_v23, %v235_v21  ;;  %v308_v25 = vpop.f32.mrb[1].mxu1  ;;  %v1390_v23 = vld [vmem:[%s2191_s3 + $0x130] sm:$0xff]  }
 0x205   :  { %v309_v26 = vadd.f32 %v308_v25, %v239_v22 }
 0x206   :  { %317 = vst [vmem:[%s2192_s7] sm:$0xff] %v307_v24 }
 0x207   :  { %318 = vst [vmem:[%s2192_s7 + $0x8] sm:$0xff] %v309_v26  ;;  %v323_v27 = vmul.f32 0.5, %v309_v26  ;;  %v312_v29 = vpop.f32.mrb[2].mxu1 }
 0x208   :  { %v313_v28 = vadd.f32 %v312_v29, %v235_v21  ;;  %v314_v31 = vpop.f32.mrb[3].mxu1  ;;  %v1388_v21 = vld [vmem:[%s2191_s3 + $0x120] sm:$0xff]  }
 0x209   :  { %v325_v32 = vmul.f32 1.442695, %v323_v27  ;;  %v315_v33 = vadd.f32 %v314_v31, %v239_v22  ;;  %v1389_v22 = vld [vmem:[%s2191_s3 + $0x128] sm:$0xff]  }
 0x20a   :  { %319 = vst [vmem:[%s2192_s7 + $0x10] sm:$0xff] %v313_v28 }
 0x20b   :  { %1852 = vpow2.f32 %v325_v32  ;;  %320 = vst [vmem:[%s2192_s7 + $0x18] sm:$0xff] %v315_v33  ;;  %v324_v30 = vmul.f32 0.5, %v315_v33  ;;  %v29_v32 = vld [vmem:[%s2189_s5 + $0x8] sm:$0xff] }
 0x20d   :  { %v327_v34 = vmul.f32 1.442695, %v324_v30 }
 0x20f   :  { %1854 = vpow2.f32 %v327_v34 }
 0x215   :  { %v1853_v36 = vpop.eup %1852 }
 0x216   :  { %v329_v37 = vmul.f32 %v1853_v36, %v321_v35  ;;  %v30_v36 = vld [vmem:[%s2189_s5 + $0x10] sm:$0xff] }
 0x218   :  { %v331_v39 = vadd.f32 %v329_v37, %v307_v24  ;;  %v1391_v24 = vld [vmem:[%s2191_s3 + $0x138] sm:$0xff]  }
 0x219   :  { %v1855_v40 = vpop.eup %1854 }
 0x21a   :  { %v330_v41 = vmul.f32 %v1855_v40, %v322_v38 }
 0x21c   :  { %v332_v42 = vadd.f32 %v330_v41, %v313_v28 }
 0x21e   :  { %v1693_v43 = vpack.c.bf16 %v332_v42, %v331_v39 }
 0x220   :  { %1694 = vmatprep.subr.bf16.mxu1 %v1693_v43 }
 0x221   :  { %1696 = vmatpush3.bf16.msra.mxu1 %v1693_v43 }
 0x222   :  { %1698 = vmatprep.subr.bf16.mxu1 %v1693_v43 }
 0x224   :  { %1564 = vmatmul.mubr.msk.f32.vlgmr.msra.gmra.mrb[4].mxu1 %vm343_vm0, %v334_v44 }
 0x225   :  { %1700 = vmatpush3.bf16.msra.mxu1 %v1693_v43  ;;  %1570 = vmatprep.mubr.msk.f32.mxu1 %vm343_vm0, %v335_v45 }
 0x226   :  { %1702 = vmatprep.subr.bf16.mxu1 %v1693_v43 }
 0x228   :  { %1571 = vmatmul.mubr.msk.f32.vlgmr.msra.gmra.mrb[6].mxu1 %vm343_vm0, %v336_v46 }
 0x229   :  { %1704 = vmatpush3.bf16.msra.mxu1 %v1693_v43  ;;  %1577 = vmatprep.mubr.msk.f32.mxu1 %vm343_vm0, %v337_v47 }
 0x22a   :  { %1706 = vmatprep.subr.bf16.mxu1 %v1693_v43 }
 0x22c   :  { %1578 = vmatmul.mubr.msk.f32.vlgmr.msra.gmra.mrb[8].mxu1 %vm343_vm0, %v338_v48 }
 0x22d   :  { %1708 = vmatpush3.bf16.msra.mxu1 %v1693_v43  ;;  %1584 = vmatprep.mubr.msk.f32.mxu1 %vm343_vm0, %v339_v49 }
 0x22e   :  { %1710 = vmatprep.subr.bf16.mxu1 %v1693_v43 }
 0x230   :  { %1585 = vmatmul.mubr.msk.f32.vlgmr.msra.gmra.mrb[10].mxu1 %vm343_vm0, %v340_v50 }
 0x231   :  { %1712 = vmatpush3.bf16.msra.mxu1 %v1693_v43  ;;  %1591 = vmatprep.mubr.msk.f32.mxu1 %vm343_vm0, %v341_v51 }
 0x232   :  { %1746 = vmatprep.subr.bf16.mxu1 %v1376_v52 }
 0x234   :  { %1592 = vmatmul.mubr.msk.f32.vlgmr.msra.gmra.mrb[12].mxu1 %vm343_vm0, %v342_v53 }
 0x235   :  { %1748 = vmatpush3.bf16.msra.mxu1 %v1368_v54 }
 0x236   :  { %1750 = vmatprep.subr.bf16.mxu1 %v1377_v55 }
 0x239   :  { %1752 = vmatpush3.bf16.msra.mxu1 %v1369_v56 }
 0x23a   :  { %1754 = vmatprep.subr.bf16.mxu1 %v1378_v57 }
 0x23d   :  { %1756 = vmatpush3.bf16.msra.mxu1 %v1370_v58 }
 0x23e   :  { %1758 = vmatprep.subr.bf16.mxu1 %v1379_v59 }
 0x241   :  { %1760 = vmatpush3.bf16.msra.mxu1 %v1371_v60 }
 0x242   :  { %1762 = vmatprep.subr.bf16.mxu1 %v1380_v61 }
 0x245   :  { %1764 = vmatpush3.bf16.msra.mxu1 %v1372_v62 }
 0x246   :  { %1766 = vmatprep.subr.bf16.mxu1 %v1381_v1 }
 0x249   :  { %1768 = vmatpush3.bf16.msra.mxu1 %v1373_v2 }
 0x24a   :  { %1770 = vmatprep.subr.bf16.mxu1 %v1382_v4 }
 0x24d   :  { %1772 = vmatpush3.bf16.msra.mxu1 %v1374_v5 }
 0x24e   :  { %1774 = vmatprep.subr.bf16.mxu1 %v1383_v6 }
 0x251   :  { %1776 = vmatpush3.bf16.msra.mxu1 %v1375_v7 }
 0x2f7   :  { %v1565_v8 = vpop.f32.mrb[4].mxu1 }
 0x2f8   :  { %v416_v9 = vpop.f32.mrb[5].mxu1 }
 0x2fb   :  { %v1572_v10 = vpop.f32.mrb[6].mxu1 }
 0x2fc   :  { %v497_v11 = vpop.f32.mrb[7].mxu1 }
 0x2fd   :  { %973 = vmatprep.mubr.f32.mxu0 %v497_v11 }
 0x2fe   :  { %974 = vmatmul.mubr.f32.vlgmr.msra.gmra.mrb[2].mxu0 %v416_v9 }
 0x2ff   :  { %1780 = vmatpush3.bf16.msra.mxu0 %v1384_v3  ;;  %v1579_v13 = vpop.f32.mrb[8].mxu1  ;;  %978 = vmatprep.mubr.f32.mxu0 %v1572_v10 }
 0x300   :  { %1782 = vmatprep.subr.bf16.mxu0 %v1385_v12  ;;  %v578_v14 = vpop.f32.mrb[9].mxu1 }
 0x302   :  { %979 = vmatmul.mubr.f32.gmra.mrb[4].mxu0 %v1565_v8 }
 0x303   :  { %1784 = vmatpush3.bf16.msra.mxu0 %v1385_v12  ;;  %v1586_v16 = vpop.f32.mrb[10].mxu1 }
 0x304   :  { %v659_v17 = vpop.f32.mrb[11].mxu1  ;;  %1786 = vmatprep.subr.bf16.mxu0 %v1386_v15 }
 0x305   :  { %1048 = vmatprep.mubr.f32.mxu1 %v659_v17 }
 0x306   :  { %1049 = vmatmul.mubr.f32.vlgmr.msra.gmra.mrb[14].mxu1 %v578_v14 }
 0x307   :  { %1788 = vmatpush3.bf16.msra.mxu0 %v1386_v15  ;;  %1053 = vmatprep.mubr.f32.mxu1 %v1586_v16  ;;  %v1593_v19 = vpop.f32.mrb[12].mxu1 }
 0x308   :  { %1790 = vmatprep.subr.bf16.mxu0 %v1387_v18  ;;  %v740_v20 = vpop.f32.mrb[13].mxu1 }
 0x309   :  { %1626 = vmatprep.mubr.f32.mxu0 %v740_v20 }
 0x30a   :  { %1054 = vmatmul.mubr.f32.gmra.mrb[16].mxu1 %v1579_v13 }
 0x30b   :  { %1792 = vmatpush3.bf16.msra.mxu0 %v1387_v18 }
 0x30c   :  { %1794 = vmatprep.subr.bf16.mxu0 %v1388_v21 }
 0x30f   :  { %1796 = vmatpush3.bf16.msra.mxu0 %v1388_v21 }
 0x310   :  { %1798 = vmatprep.subr.bf16.mxu0 %v1389_v22 }
 0x313   :  { %1800 = vmatpush3.bf16.msra.mxu0 %v1389_v22 }
 0x314   :  { %1802 = vmatprep.subr.bf16.mxu0 %v1390_v23 }
 0x317   :  { %1804 = vmatpush3.bf16.msra.mxu0 %v1390_v23 }
 0x318   :  { %1806 = vmatprep.subr.bf16.mxu0 %v1391_v24 }
 0x31b   :  { %1808 = vmatpush3.bf16.msra.mxu0 %v1391_v24 }
 0x31e   :  { %1627 = vmatmul.mubr.f32.vlgmr.msra.gmra.mrb[6].mxu0 %v1593_v19 }
 0x3d1   :  { %v1462_v25 = vpop.f32.mrb[2].mxu0 }
 0x3d2   :  { %v1463_v26 = vpop.f32.mrb[3].mxu0 }
 0x3d3   :  { %v1464_v27 = vadd.f32 %v1463_v26, %v1462_v25 }
 0x3d5   :  { %v1465_v29 = vpop.f32.mrb[4].mxu0  ;;  %v976_v34 = vadd.f32 %v1464_v27, %v29_v32 }
 0x3d6   :  { %v1466_v28 = vpop.f32.mrb[5].mxu0 }
 0x3d7   :  { %v1467_v31 = vadd.f32 %v1466_v28, %v1465_v29 }
 0x3d9   :  { %v1500_v33 = vpop.f32.mrb[14].mxu1  ;;  %v981_v40 = vadd.f32 %v1467_v31, %v30_v36 }
 0x3da   :  { %v1501_v30 = vpop.f32.mrb[15].mxu1 }
 0x3db   :  { %v1502_v35 = vadd.f32 %v1501_v30, %v1500_v33 }
 0x3dd   :  { %v1503_v37 = vpop.f32.mrb[16].mxu1  ;;  %v1051_v38 = vadd.f32 %v1502_v35, %v976_v34 }
 0x3de   :  { %v1504_v39 = vpop.f32.mrb[17].mxu1 }
 0x3df   :  { %v1505_v41 = vadd.f32 %v1504_v39, %v1503_v37 }
 0x3e1   :  { %v1056_v42 = vadd.f32 %v1505_v41, %v981_v40 }
 0x3f1   :  { %v1628_v43 = vpop.f32.mrb[6].mxu0 }
 0x3f2   :  { %v1131_v44 = vadd.f32 %v1628_v43, %v1056_v42  ;;  %v1125_v45 = vpop.f32.mrb[7].mxu0 }
 0x3f3   :  { %v1126_v46 = vadd.f32 %v1125_v45, %v1051_v38 }
 0x3f4   :  { %1135 = vst [vmem:[%s2194_s8 + $0x8] sm:$0xff] %v1131_v44 }
 0x3f5   :  { %1134 = vst [vmem:[%s2194_s8] sm:$0xff] %v1126_v46 }

</bundles_post_ra>
